<compile_context>
chip_gen: v6e
topology: v6e:2x2x1
jax: 0.10.0
libtpu: 0.0.40
codegen_flags: <defaults>
</compile_context>

<pallas_src>
import functools

import jax
import jax.numpy as jnp
from jax.experimental import pallas as pl
from jax.experimental.pallas import tpu as pltpu


def _round_up(x, m):
    return (x + m - 1) // m * m


@functools.lru_cache(maxsize=1)
def _tpu_generation():
    """Best-effort TPU generation (5/6/7) from device_kind; defaults to 6."""
    try:
        kind = jax.devices()[0].device_kind.lower()
    except Exception:
        return 6
    for g in (7, 6, 5, 4):
        if f"v{g}" in kind:
            return g
    return 6


def fold_bn_into_linear(weight, bias, gamma, beta, running_mean, running_var,
                        eps=1e-5):
    """Fold eval-mode BatchNorm1d into Linear params (do once at param prep).

    weight: (hidden, input_dim) as in nn.Linear.
    Returns:
      w_folded: (input_dim, hidden) bf16, such that  y = x @ w_folded + shift
      shift   : (1, hidden) f32
    """
    inv_std = jax.lax.rsqrt(running_var.astype(jnp.float32) + eps)
    scale = gamma.astype(jnp.float32) * inv_std                       # (H,)
    w_folded = weight.astype(jnp.float32).T * scale[None, :]          # (D, H)
    shift = (bias.astype(jnp.float32)
             - running_mean.astype(jnp.float32)) * scale \
        + beta.astype(jnp.float32)                                    # (H,)
    return w_folded.astype(jnp.bfloat16), shift.reshape(1, -1)


# --------------------------------------------------------------------------
# Kernels
# --------------------------------------------------------------------------
def _fc_bn_relu_small_kernel(x_ref, w_ref, b_ref, o_ref):
    """Whole problem in one block: o = relu(x @ w + b). Dropout = id (eval)."""
    z = jnp.dot(x_ref[...].astype(jnp.bfloat16),
                w_ref[...].astype(jnp.bfloat16),
                preferred_element_type=jnp.float32) + b_ref[...]
    o_ref[...] = jnp.maximum(z, 0.0).astype(o_ref.dtype)


def _fc_bn_relu_tiled_kernel(x_ref, w_ref, b_ref, o_ref):
    """Tiled matmul; accumulate in f32 directly into the resident o_ref block
    across the K ('arbitrary') grid axis; bias + ReLU in the K epilogue."""
    k = pl.program_id(2)

    @pl.when(k == 0)
    def _():
        o_ref[...] = jnp.zeros_like(o_ref)

    o_ref[...] += jnp.dot(x_ref[...].astype(jnp.bfloat16),
                          w_ref[...].astype(jnp.bfloat16),
                          preferred_element_type=jnp.float32)

    @pl.when(k == pl.num_programs(2) - 1)
    def _():
        o_ref[...] = jnp.maximum(o_ref[...] + b_ref[...], 0.0)  # ReLU; dropout=id


# --------------------------------------------------------------------------
# Wrapper
# --------------------------------------------------------------------------
@jax.jit
def fc_batchnorm_relu_dropout(x, w_folded, shift):
    """x: (B, D) float; w_folded: (D, H) bf16; shift: (1, H) f32 -> (B, H) f32."""
    B, D = x.shape
    D2, H = w_folded.shape
    assert D == D2
    shift = shift.astype(jnp.float32).reshape(1, H)

    # ---- small-shape fast path: single full-array block, no grid, no pad ----
    total_bytes = (B * D * x.dtype.itemsize + D * H * 2 + B * H * 4 + H * 4)
    if total_bytes <= (4 << 20):
        return pl.pallas_call(
            _fc_bn_relu_small_kernel,
            out_shape=jax.ShapeDtypeStruct((B, H), jnp.float32),
            in_specs=[pl.BlockSpec(memory_space=pltpu.MemorySpace.VMEM)] * 3,
            out_specs=pl.BlockSpec(memory_space=pltpu.MemorySpace.VMEM),
        )(x, w_folded, shift)

    # ---- generation-aware tile selection ----
    gen = _tpu_generation()
    if gen >= 7:          # 64 MiB VMEM per TC, 2 TCs
        tm_cap, tn_cap, tk_cap, vmem_cap = 1024, 2048, 1024, 56 << 20
    elif gen == 6:        # 128 MiB VMEM
        tm_cap, tn_cap, tk_cap, vmem_cap = 1024, 2048, 1024, 112 << 20
    else:                 # v5e: lower roofline threshold, smaller tiles suffice
        tm_cap, tn_cap, tk_cap, vmem_cap = 512, 512, 512, 100 << 20

    tm = min(tm_cap, _round_up(B, 8))      # sublane multiple
    tn = min(tn_cap, _round_up(H, 128))    # lane multiple
    tk = min(tk_cap, _round_up(D, 128))    # lane multiple

    # v7x megacore: make sure the parallel (M,N) grid has >= 2 blocks.
    if gen >= 7 and pl.cdiv(B, tm) * pl.cdiv(H, tn) < 2:
        if H > 128:
            tn = max(128, _round_up(pl.cdiv(H, 2), 128))
        elif B > 8:
            tm = max(8, _round_up(pl.cdiv(B, 2), 8))

    # Pad only the K (reduction) dim — required for accumulation correctness.
    # Ragged M/N edge blocks are fine: OOB output writes are masked.
    Dp = pl.cdiv(D, tk) * tk
    if Dp != D:
        x = jnp.pad(x, ((0, 0), (0, Dp - D)))
        w_folded = jnp.pad(w_folded, ((0, Dp - D), (0, 0)))

    n_i, n_j, n_k = pl.cdiv(B, tm), pl.cdiv(H, tn), Dp // tk
    grid = (n_i, n_j, n_k)

    x_bytes = x.dtype.itemsize
    # Double-buffered x + W + out tiles (+ shift); no separate accumulator.
    vmem_needed = 2 * (tm * tk * x_bytes + tk * tn * 2 + tm * tn * 4) + 2 * tn * 4
    vmem_limit = int(min(vmem_cap, max(32 << 20, vmem_needed + (8 << 20))))

    cost = pl.CostEstimate(
        flops=2 * B * Dp * H,
        transcendentals=0,
        # x is re-streamed n_j times, W re-streamed n_i times.
        bytes_accessed=(B * Dp * x_bytes) * n_j + (Dp * H * 2) * n_i
                       + (H * 4) * n_i + B * H * 4,
    )

    return pl.pallas_call(
        _fc_bn_relu_tiled_kernel,
        out_shape=jax.ShapeDtypeStruct((B, H), jnp.float32),
        grid_spec=pltpu.PrefetchScalarGridSpec(
            num_scalar_prefetch=0,
            grid=grid,
            in_specs=[
                pl.BlockSpec((tm, tk), lambda i, j, k: (i, k)),   # x tile
                pl.BlockSpec((tk, tn), lambda i, j, k: (k, j)),   # W' tile
                pl.BlockSpec((1, tn), lambda i, j, k: (0, j)),    # shift tile
            ],
            out_specs=pl.BlockSpec((tm, tn), lambda i, j, k: (i, j)),
        ),
        compiler_params=pltpu.CompilerParams(
            dimension_semantics=("parallel", "parallel", "arbitrary"),
            vmem_limit_bytes=vmem_limit,
        ),
        cost_estimate=cost,
    )(x, w_folded, shift)


# --------------------------------------------------------------------------
# Demo / correctness check
# --------------------------------------------------------------------------
def _make_params(key, input_dim, hidden_dims):
    kw, kb, kg, kbeta, kmean, kvar = jax.random.split(key, 6)
    weight = jax.random.normal(kw, (hidden_dims, input_dim), jnp.float32) * 0.1
    bias = jax.random.normal(kb, (hidden_dims,), jnp.float32) * 0.1
    gamma = 1.0 + 0.1 * jax.random.normal(kg, (hidden_dims,), jnp.float32)
    beta = 0.1 * jax.random.normal(kbeta, (hidden_dims,), jnp.float32)
    running_mean = 0.1 * jax.random.normal(kmean, (hidden_dims,), jnp.float32)
    running_var = jnp.abs(1.0 + 0.1 * jax.random.normal(kvar, (hidden_dims,),
                                                        jnp.float32))
    return weight, bias, gamma, beta, running_mean, running_var


if __name__ == "__main__":
    key = jax.random.PRNGKey(0)
    k_small, k_big, kx1, kx2 = jax.random.split(key, 4)

    # ---- Test 1: small shapes consistent with the module (fast path) ----
    batch, input_dim, hidden_dims = 8, 16, 32
    x = jax.random.normal(kx1, (batch, input_dim), dtype=jnp.float32)
    weight, bias, gamma, beta, rmean, rvar = _make_params(k_small, input_dim,
                                                          hidden_dims)
    w_folded, shift = fold_bn_into_linear(weight, bias, gamma, beta,
                                          rmean, rvar, eps=1e-5)
    y = jax.block_until_ready(fc_batchnorm_relu_dropout(x, w_folded, shift))
    assert y.shape == (batch, hidden_dims)

    # Tight check against a reference using the same bf16-quantized operands.
    x_q = x.astype(jnp.bfloat16).astype(jnp.float32)
    w_q = w_folded.astype(jnp.float32)
    ref_q = jnp.maximum(x_q @ w_q + shift, 0.0)
    assert jnp.allclose(y, ref_q, atol=1e-4, rtol=1e-4)

    # Loose check against the full-precision PyTorch-equivalent eval path.
    inv_std = 1.0 / jnp.sqrt(rvar + 1e-5)
    ref_f32 = jnp.maximum((x @ weight.T + bias - rmean) * (gamma * inv_std)
                          + beta, 0.0)
    assert jnp.allclose(y, ref_f32, atol=5e-2, rtol=5e-2)

    # ---- Test 2: exercise the tiled path (multi-K accumulation, K-pad,
    #              ragged M/N edges, megacore split on v7x) ----
    B2, D2, H2 = 512, 1500, 640
    x2 = jax.random.normal(kx2, (B2, D2), dtype=jnp.float32)
    weight2, bias2, gamma2, beta2, rmean2, rvar2 = _make_params(k_big, D2, H2)
    w2_folded, shift2 = fold_bn_into_linear(weight2, bias2, gamma2, beta2,
                                            rmean2, rvar2, eps=1e-5)
    y2 = jax.block_until_ready(fc_batchnorm_relu_dropout(x2, w2_folded, shift2))
    assert y2.shape == (B2, H2)

    x2_q = x2.astype(jnp.bfloat16).astype(jnp.float32)
    ref2_q = jnp.maximum(x2_q @ w2_folded.astype(jnp.float32) + shift2, 0.0)
    assert jnp.allclose(y2, ref2_q, atol=5e-3, rtol=5e-3)

    print("KERNEL_OK")
</pallas_src>

<mosaic_0001>
module attributes {stable_mosaic.version = 11 : i64} {
  func.func @_fc_bn_relu_small_kernel(%arg0: memref<8x16xf32, #tpu.memory_space<vmem>>, %arg1: memref<16x32xbf16, #tpu.memory_space<vmem>>, %arg2: memref<1x32xf32, #tpu.memory_space<vmem>>, %arg3: memref<8x32xf32, #tpu.memory_space<vmem>>) attributes {dimension_semantics = [], scalar_prefetch = 0 : i64, scratch_operands = 0 : i64, tpu.core_type = #tpu.core_type<tc>} {
    %c0 = arith.constant 0 : index
    %c0_0 = arith.constant 0 : index
    %0 = vector.load %arg0[%c0, %c0_0] : memref<8x16xf32, #tpu.memory_space<vmem>>, vector<8x16xf32>
    %1 = arith.truncf %0 : vector<8x16xf32> to vector<8x16xbf16>
    %c0_1 = arith.constant 0 : index
    %c0_2 = arith.constant 0 : index
    %2 = vector.load %arg1[%c0_1, %c0_2] : memref<16x32xbf16, #tpu.memory_space<vmem>>, vector<16x32xbf16>
    %cst = arith.constant dense<0.000000e+00> : vector<8x32xf32>
    %3 = tpu.matmul %1, %2, %cst {dimension_numbers = #tpu.dot_dimension_numbers<[1], [0], [0], [1], [0, 0, 1, 1], [], []>} : vector<8x16xbf16>, vector<16x32xbf16>, vector<8x32xf32> -> vector<8x32xf32>
    %c0_3 = arith.constant 0 : index
    %c0_4 = arith.constant 0 : index
    %4 = vector.load %arg2[%c0_3, %c0_4] : memref<1x32xf32, #tpu.memory_space<vmem>>, vector<1x32xf32>
    %5 = vector.broadcast %4 : vector<1x32xf32> to vector<8x32xf32>
    %6 = arith.addf %3, %5 : vector<8x32xf32>
    %cst_5 = arith.constant 0.000000e+00 : f32
    %7 = vector.broadcast %cst_5 : f32 to vector<8x32xf32>
    %8 = arith.maximumf %6, %7 : vector<8x32xf32>
    %c0_6 = arith.constant 0 : index
    %c0_7 = arith.constant 0 : index
    %9 = vector.load %arg3[%c0_6, %c0_7] : memref<8x32xf32, #tpu.memory_space<vmem>>, vector<8x32xf32>
    tpu.vector_store %arg3[%c0_6, %c0_7], %8 {strides = array<i32>} : memref<8x32xf32, #tpu.memory_space<vmem>>, vector<8x32xf32>,
    return
  }
}

</mosaic_0001>

<bundles_post_ra>
// kernel: fc_batchnorm_relu_dropout.1
= control target key start
LH: loop header
LB: loop body
LE: loop exit
PB: predicated region body
PF: predicated region fallthrough
CT: control target
= control target key end

     0   :  { %8 = vsyncpa [#allocation3], 0  ;;  %s246_s0 = inlined_call_operand.hbm [shape: f32[8,16], index: 0, kind: input, shape index: {}]   ;;  %s247_s1 = inlined_call_operand.hbm [shape: bf16[16,32], index: 1, kind: input, shape index: {}]   ;;  %s248_s2 = inlined_call_operand.vmem [shape: f32[1,32], index: 2, kind: input, shape index: {}]   ;;  %s249_s3 = inlined_call_operand.hbm [shape: f32[8,32], index: 3, kind: output, shape index: {}]  }
   0x1   :  { %9 = vsyncpa [#allocation6], 0 }
   0x2   :  { %10 = vsyncpa [#allocation4], 0  ;;  %s207_s12 = smov [#allocation2]   ;;  %s208_s14 = smov [#allocation5]  }
   0x3   :  { %s17_s13 = sshll.u32 %s207_s12, 4  ;;  %s26_s15 = sshll.u32 %s208_s14, 4  ;;  %s18_s13 = int_to_ptr.vmem [resolvable:$true] %s17_s13  ;;  %s27_s15 = int_to_ptr.vmem [resolvable:$true] %s26_s15 }
   0x4   :  { %s149_s16 = scalar_lea.vmem %s18_s13, 128  ;;  %p154_p1 = scmp.lt.s32.totalorder %s18_s13, %s18_s13 }
   0x5   :  { %p150_p0 = scmp.ne.s32.totalorder %s18_s13, %s149_s16  ;;  %p155_p2 = scmp.lt.s32.totalorder %s149_s16, %s149_s16 }
   0x7   :  { %p156_p3 = por %p155_p2, %p154_p1 }
   0x9   :  { %p157_p4 = pnand %p156_p3, %p150_p0 }
   0xb   :  { %160 = shalt.err (!%p157_p4)
}
   0xc   :  { %20 = dma.hbm_to_vmem [thread:$0]  %s246_s0, 128, %s18_s13, [#allocation3]  }
   0xd   :  { %s169_s19 = scalar_lea.vmem %s27_s15, 128  ;;  %p174_p6 = scmp.lt.s32.totalorder %s27_s15, %s27_s15 }
   0xe   :  { %p170_p5 = scmp.ne.s32.totalorder %s27_s15, %s169_s19  ;;  %p175_p7 = scmp.lt.s32.totalorder %s169_s19, %s169_s19 }
  0x10   :  { %p176_p8 = por %p175_p7, %p174_p6 }
  0x12   :  { %p177_p9 = pnand %p176_p8, %p170_p5 }
  0x14   :  { %180 = shalt.err (!%p177_p9)
}
  0x15   :  { %s209_s20 = smov 64   ;;  %s210_s21 = smov 4  }
  0x16   :  { %32 = dma.hbm_to_vmem [thread:$0]  %s247_s1, 128, %s27_s15, [#allocation6], %s209_s20, %s209_s20, %s210_s21  }
  0x17   :  { %201 = dma.done.wait [#allocation3], 128  }
  0x18   :  { %202 = vsyncadd [#allocation3], 4294967168 }
  0x19   :  { %203 = dma.done.wait [#allocation6], 128  }
  0x1a   :  { %204 = vsyncadd [#allocation6], 4294967168  ;;  %v211_v0 = vmov 0.0   ;;  %vm212_vm0 = vmmov 0   ;;  %v140_v1 = vld [vmem:[#allocation5] sm:$0xff]   ;;  %v42_v2 = vld [vmem:[#allocation2] sm:$0xff] }
  0x1b   :  { %127 = vmatprep.subr.bf16.mxu0 %v211_v0  ;;  %129 = vmatprep.mubr.msk.bf16.mxu0 %vm212_vm0, %v211_v0  ;;  %v43_v3 = vpack.c.bf16 %v42_v2, %v42_v2  ;;  %vm59_vm1 = vcmask 130048   ;;  %v122_v4 = vld [vmem:[%s248_s2] ss:$0 sm:$0xff]  ;;  %s213_s1 = smov [#allocation7]   ;;  %vm104_vm2 = vcmask 261120  }
  0x1c   :  { %128 = vmatpush3.bf16.msra.mxu0 %v140_v1  ;;  %s112_s25 = sshll.u32 %s213_s1, 4  ;;  %s113_s25 = int_to_ptr.vmem [resolvable:$true] %s112_s25 }
  0x1d   :  { %s181_s26 = scalar_lea.vmem %s113_s25, 128  ;;  %p186_p11 = scmp.lt.s32.totalorder %s113_s25, %s113_s25 }
  0x1e   :  { %p182_p10 = scmp.ne.s32.totalorder %s113_s25, %s181_s26  ;;  %p187_p12 = scmp.lt.s32.totalorder %s181_s26, %s181_s26 }
  0x1f   :  { %130 = vmatmul.mubr.msk.bf16.vlgmr.msra.gmra.mxu0 %vm59_vm1, %v43_v3 }
  0x20   :  { %p188_p13 = por %p187_p12, %p186_p11 }
  0x22   :  { %p189_p0 = pnand %p188_p13, %p182_p10 }
  0xdf   :  { %v97_v5 = vpop.f32.mrf.mxu0 }
  0xe0   :  { %v98_v6 = vadd.f32 %v122_v4, %v97_v5 }
  0xe1   :  { %v131_v7 = vpop.f32.mrf.mxu0 }
  0xe2   :  { %v103_v8 = vmax.f32 %v98_v6, 0.0 }
  0xe3   :  { %v100_v9 = vpop.f32.mrf.mxu0 }
  0xe4   :  { %105 = vst.msk [vmem:[#allocation7] sm:$0xff] %vm104_vm2, %v103_v8 }
  0xe5   :  { %v132_v10 = vpop.f32.mrf.mxu0 }
  0xe6   :  { %192 = shalt.err (!%p189_p0)
}
  0xe7   :  { %115 = dma.vmem_to_hbm [thread:$0]  %s113_s25, 128, %s249_s3, [#allocation4]  }
  0xe8   :  { %205 = dma.done.wait [#allocation4], 128  }
  0xe9   :  { %206 = vsyncadd [#allocation4], 4294967168 }
  0xea   :  { %119 = vsyncpa [#allocation3], 1 }
  0xeb   :  { %120 = vsyncpa [#allocation6], 1 }
  0xec   :  { %121 = vsyncpa [#allocation4], 1 }

</bundles_post_ra>
